<compile_context>
chip_gen: v7x
topology: tpu7x:2x2x1
jax: 0.10.0
libtpu: 0.0.40
codegen_flags: <defaults>
</compile_context>

<pallas_src>
import jax
import jax.numpy as jnp
from jax import lax
from jax.experimental import pallas as pl
from jax.experimental.pallas import tpu as pltpu

_LANES = 128
# 2048 x 128 f32 = 1 MiB per input tile; 3 inputs x 2 buffers + 1 MiB acc
# ~= 7 MiB VMEM -> fits the default scoped VMEM limit on v5e / v6e / v7x.
_MAX_TILE_ROWS = 2048


def _cdiv(a, b):
    return -(-a // b)


def _to_lane_slab(a):
    """Flatten to a (rows, 128) lane-dense slab. Zero-copy when size % 128 == 0."""
    n = a.size
    flat = a.reshape(-1)
    rem = n % _LANES
    if rem != 0:
        # Rare ragged tail: tiny zero-pad to the next lane multiple (benign for a sum).
        flat = jnp.pad(flat, (0, _LANES - rem))
    return flat.reshape(-1, _LANES)


def _make_kernel(steps, tile_rows, total_rows, needs_mask):
    def kernel(x_ref, y_ref, z_ref, o_ref, acc_ref):
        k = pl.program_id(1)

        @pl.when(k == 0)
        def _():
            acc_ref[...] = jnp.zeros_like(acc_ref)

        s = (x_ref[...].astype(jnp.float32)
             + y_ref[...].astype(jnp.float32)
             + z_ref[...].astype(jnp.float32))

        if needs_mask:
            # Zero out rows past the real extent (partial / duplicated blocks).
            logical_block = pl.program_id(0) * steps + k
            row_base = logical_block * tile_rows
            row_ids = lax.broadcasted_iota(jnp.int32, s.shape, 0) + row_base
            s = jnp.where(row_ids < total_rows, s, 0.0)

        # Hot loop: pure VPU adds into a tile-shaped accumulator (no XLU work).
        acc_ref[...] = acc_ref[...] + s

        # Finalize: one cross-sublane reduce per split; the cheap cross-lane
        # reduce of the tiny (splits, 1, 128) result happens in the wrapper.
        @pl.when(k == steps - 1)
        def _():
            o_ref[...] = jnp.sum(acc_ref[...], axis=0, keepdims=True)

    return kernel


def trinet_loss(x, y, z):
    """Pallas implementation of TriNetLoss.forward(x, y, z)."""
    assert x.shape == y.shape == z.shape
    batch_size = x.shape[0]

    x2, y2, z2 = _to_lane_slab(x), _to_lane_slab(y), _to_lane_slab(z)
    rows = x2.shape[0]

    tile_rows = rows if rows <= _MAX_TILE_ROWS else _MAX_TILE_ROWS
    num_blocks = _cdiv(rows, tile_rows)
    # Leading 'parallel' axis: lets v7x shard the row range across its 2 TCs.
    splits = 2 if num_blocks >= 2 else 1
    steps = _cdiv(num_blocks, splits)
    needs_mask = (num_blocks * tile_rows != rows) or (splits * steps != num_blocks)

    if splits * steps > num_blocks:
        # Clamp the duplicated trailing block into range; kernel masks it to 0.
        def in_map(p, k):
            return (jnp.minimum(p * steps + k, num_blocks - 1), 0)
    else:
        def in_map(p, k):
            return (p * steps + k, 0)

    tile_spec = pl.BlockSpec((tile_rows, _LANES), in_map)
    out_spec = pl.BlockSpec((None, 1, _LANES), lambda p, k: (p, 0, 0))

    partials = pl.pallas_call(
        _make_kernel(steps, tile_rows, rows, needs_mask),
        out_shape=jax.ShapeDtypeStruct((splits, 1, _LANES), jnp.float32),
        grid_spec=pltpu.PrefetchScalarGridSpec(
            num_scalar_prefetch=0,
            grid=(splits, steps),
            in_specs=[tile_spec, tile_spec, tile_spec],
            out_specs=out_spec,
            scratch_shapes=[pltpu.VMEM((tile_rows, _LANES), jnp.float32)],
        ),
        compiler_params=pltpu.CompilerParams(
            dimension_semantics=("parallel", "arbitrary"),
        ),
    )(x2, y2, z2)

    return jnp.sum(partials) / batch_size


if __name__ == "__main__":
    key = jax.random.PRNGKey(0)
    kx, ky, kz = jax.random.split(key, 3)

    # Small NCHW-like shapes consistent with the module's usage.
    shape = (2, 4, 16, 16)
    x = jax.random.normal(kx, shape, dtype=jnp.float32)
    y = jax.random.normal(ky, shape, dtype=jnp.float32)
    z = jax.random.normal(kz, shape, dtype=jnp.float32)

    result = trinet_loss(x, y, z)
    jax.block_until_ready(result)

    # Reference check (plain JAX) to validate semantics.
    ref = jnp.sum(x + y + z) / shape[0]
    assert jnp.allclose(result, ref, rtol=1e-5, atol=1e-5), (result, ref)

    print("KERNEL_OK")
</pallas_src>

<mosaic_0001>
module attributes {stable_mosaic.version = 11 : i64} {
  func.func @kernel(%arg0: i32, %arg1: i32, %arg2: memref<16x128xf32, #tpu.memory_space<vmem>>, %arg3: memref<16x128xf32, #tpu.memory_space<vmem>>, %arg4: memref<16x128xf32, #tpu.memory_space<vmem>>, %arg5: memref<1x1x128xf32, #tpu.memory_space<vmem>>, %arg6: memref<16x128xf32, #tpu.memory_space<vmem>>) attributes {dimension_semantics = [#tpu.dimension_semantics<parallel>, #tpu.dimension_semantics<arbitrary>], iteration_bounds = array<i64: 1, 1>, scalar_prefetch = 0 : i64, scratch_operands = 1 : i64, tpu.core_type = #tpu.core_type<tc>, window_params = [{transform_indices = @transform_0, window_bounds = array<i64: 16, 128>}, {transform_indices = @transform_1, window_bounds = array<i64: 16, 128>}, {transform_indices = @transform_2, window_bounds = array<i64: 16, 128>}, {transform_indices = @transform_3, window_bounds = array<i64: 1, 1, 128>}]} {
    %c0_i32 = arith.constant 0 : i32
    %0 = arith.cmpi eq, %arg1, %c0_i32 : i32
    %1 = arith.extui %0 : i1 to i32
    %c0_i32_0 = arith.constant 0 : i32
    %2 = arith.cmpi ne, %1, %c0_i32_0 : i32
    scf.if %2 {
      %cst = arith.constant 0.000000e+00 : f32
      %14 = vector.broadcast %cst : f32 to vector<16x128xf32>
      %c0_12 = arith.constant 0 : index
      %c0_13 = arith.constant 0 : index
      %15 = vector.load %arg6[%c0_12, %c0_13] : memref<16x128xf32, #tpu.memory_space<vmem>>, vector<16x128xf32>
      tpu.vector_store %arg6[%c0_12, %c0_13], %14 {strides = array<i32>} : memref<16x128xf32, #tpu.memory_space<vmem>>, vector<16x128xf32>,
    } else {
    }
    %c0 = arith.constant 0 : index
    %c0_1 = arith.constant 0 : index
    %3 = vector.load %arg2[%c0, %c0_1] : memref<16x128xf32, #tpu.memory_space<vmem>>, vector<16x128xf32>
    %c0_2 = arith.constant 0 : index
    %c0_3 = arith.constant 0 : index
    %4 = vector.load %arg3[%c0_2, %c0_3] : memref<16x128xf32, #tpu.memory_space<vmem>>, vector<16x128xf32>
    %5 = arith.addf %3, %4 : vector<16x128xf32>
    %c0_4 = arith.constant 0 : index
    %c0_5 = arith.constant 0 : index
    %6 = vector.load %arg4[%c0_4, %c0_5] : memref<16x128xf32, #tpu.memory_space<vmem>>, vector<16x128xf32>
    %7 = arith.addf %5, %6 : vector<16x128xf32>
    %c0_6 = arith.constant 0 : index
    %c0_7 = arith.constant 0 : index
    %8 = vector.load %arg6[%c0_6, %c0_7] : memref<16x128xf32, #tpu.memory_space<vmem>>, vector<16x128xf32>
    %9 = arith.addf %8, %7 : vector<16x128xf32>
    %c0_8 = arith.constant 0 : index
    %c0_9 = arith.constant 0 : index
    %10 = vector.load %arg6[%c0_8, %c0_9] : memref<16x128xf32, #tpu.memory_space<vmem>>, vector<16x128xf32>
    tpu.vector_store %arg6[%c0_8, %c0_9], %9 {strides = array<i32>} : memref<16x128xf32, #tpu.memory_space<vmem>>, vector<16x128xf32>,
    %c0_i32_10 = arith.constant 0 : i32
    %11 = arith.cmpi eq, %arg1, %c0_i32_10 : i32
    %12 = arith.extui %11 : i1 to i32
    %c0_i32_11 = arith.constant 0 : i32
    %13 = arith.cmpi ne, %12, %c0_i32_11 : i32
    scf.if %13 {
      %c0_12 = arith.constant 0 : index
      %c0_13 = arith.constant 0 : index
      %14 = vector.load %arg6[%c0_12, %c0_13] : memref<16x128xf32, #tpu.memory_space<vmem>>, vector<16x128xf32>
      %cst = arith.constant dense<0.000000e+00> : vector<128xf32>
      %15 = vector.multi_reduction <add>, %14, %cst [0] : vector<16x128xf32> to vector<128xf32>
      %16 = vector.shape_cast %15 : vector<128xf32> to vector<1x128xf32>
      %c0_14 = arith.constant 0 : index
      %c0_15 = arith.constant 0 : index
      %c0_16 = arith.constant 0 : index
      %17 = vector.load %arg5[%c0_14, %c0_15, %c0_16] : memref<1x1x128xf32, #tpu.memory_space<vmem>>, vector<1x1x128xf32>
      %18 = vector.shape_cast %17 : vector<1x1x128xf32> to vector<1x128xf32>
      %19 = vector.shape_cast %16 : vector<1x128xf32> to vector<1x1x128xf32>
      tpu.vector_store %arg5[%c0_14, %c0_15, %c0_16], %19 {strides = array<i32>} : memref<1x1x128xf32, #tpu.memory_space<vmem>>, vector<1x1x128xf32>,
    } else {
    }
    return
  }
  func.func @transform_0(%arg0: i32, %arg1: i32) -> (i32, i32) {
    %c1_i32 = arith.constant 1 : i32
    %0 = arith.muli %arg0, %c1_i32 : i32
    %1 = arith.addi %0, %arg1 : i32
    %c0_i32 = arith.constant 0 : i32
    %c0_i32_0 = arith.constant 0 : i32
    return %1, %c0_i32 : i32, i32
  }
  func.func @transform_1(%arg0: i32, %arg1: i32) -> (i32, i32) {
    %c1_i32 = arith.constant 1 : i32
    %0 = arith.muli %arg0, %c1_i32 : i32
    %1 = arith.addi %0, %arg1 : i32
    %c0_i32 = arith.constant 0 : i32
    %c0_i32_0 = arith.constant 0 : i32
    return %1, %c0_i32 : i32, i32
  }
  func.func @transform_2(%arg0: i32, %arg1: i32) -> (i32, i32) {
    %c1_i32 = arith.constant 1 : i32
    %0 = arith.muli %arg0, %c1_i32 : i32
    %1 = arith.addi %0, %arg1 : i32
    %c0_i32 = arith.constant 0 : i32
    %c0_i32_0 = arith.constant 0 : i32
    return %1, %c0_i32 : i32, i32
  }
  func.func @transform_3(%arg0: i32, %arg1: i32) -> (i32, i32, i32) {
    %c0_i32 = arith.constant 0 : i32
    %c0_i32_0 = arith.constant 0 : i32
    %c0_i32_1 = arith.constant 0 : i32
    return %arg0, %c0_i32, %c0_i32_0 : i32, i32, i32
  }
}

</mosaic_0001>

<bundles_post_ra>
// kernel: tpu_custom_call.1
= control target key start
LH: loop header
LB: loop body
LE: loop exit
PB: predicated region body
PF: predicated region fallthrough
CT: control target
= control target key end

     0   :  { %8 = vsyncpa [#allocation4], 0  ;;  %s315_s0 = inlined_call_operand.hbm [shape: f32[16,128], index: 0, kind: input, shape index: {}]   ;;  %s316_s1 = inlined_call_operand.hbm [shape: f32[16,128], index: 1, kind: input, shape index: {}]   ;;  %s317_s2 = inlined_call_operand.hbm [shape: f32[16,128], index: 2, kind: input, shape index: {}]   ;;  %s318_s3 = inlined_call_operand.hbm [shape: f32[1,1,128], index: 3, kind: output, shape index: {}]  }
   0x1   :  { %9 = vsyncpa [#allocation7], 0 }
   0x2   :  { %10 = vsyncpa [#allocation5], 0  ;;  %s225_s12 = smov [#allocation6]   ;;  %s226_s14 = smov [#allocation3]  }
   0x3   :  { %s36_s13 = sshll.u32 %s225_s12, 4  ;;  %s20_s15 = sshll.u32 %s226_s14, 4  ;;  %s37_s13 = int_to_ptr.vmem [resolvable:$true] %s36_s13  ;;  %s251_s15 = int_to_ptr.vmem [resolvable:$true] %s20_s15 }
   0x4   :  { %s131_s18 = scalar_lea.hbm %s316_s1, 256 }
   0x5   :  { %p132_p0 = scmp.ne.s32.totalorder %s316_s1, %s131_s18  ;;  %p135_p1 = scmp.lt.u32.totalorder %s131_s18, %s316_s1 }
   0x7   :  { %p137_p2 = pnand %p135_p1, %p132_p0 }
   0x9   :  { %140 = shalt.err (!%p137_p2)
}
   0xa   :  { %s141_s23 = scalar_lea.vmem %s37_s13, 256  ;;  %p146_p4 = scmp.lt.s32.totalorder %s37_s13, %s37_s13 }
   0xb   :  { %p142_p3 = scmp.ne.s32.totalorder %s37_s13, %s141_s23  ;;  %p147_p5 = scmp.lt.s32.totalorder %s141_s23, %s141_s23 }
   0xd   :  { %p148_p6 = por %p147_p5, %p146_p4 }
   0xf   :  { %p149_p7 = pnand %p148_p6, %p142_p3 }
  0x11   :  { %152 = shalt.err (!%p149_p7)
}
  0x12   :  { %s227_s24 = smov 128   ;;  %s228_s25 = smov 8  }
  0x13   :  { %42 = dma.hbm_to_vmem [thread:$0]  %s316_s1, 256, %s37_s13, [#allocation7], %s227_s24, %s227_s24, %s228_s25  }
  0x14   :  { %s153_s30 = scalar_lea.hbm %s315_s0, 256 }
  0x15   :  { %p154_p8 = scmp.ne.s32.totalorder %s315_s0, %s153_s30  ;;  %p157_p9 = scmp.lt.u32.totalorder %s153_s30, %s315_s0 }
  0x17   :  { %p159_p10 = pnand %p157_p9, %p154_p8 }
  0x19   :  { %162 = shalt.err (!%p159_p10)
}
  0x1a   :  { %s163_s8 = scalar_lea.vmem %s251_s15, 256  ;;  %p168_p12 = scmp.lt.s32.totalorder %s251_s15, %s251_s15 }
  0x1b   :  { %p164_p11 = scmp.ne.s32.totalorder %s251_s15, %s163_s8  ;;  %p169_p13 = scmp.lt.s32.totalorder %s163_s8, %s163_s8 }
  0x1d   :  { %p170_p0 = por %p169_p13, %p168_p12 }
  0x1f   :  { %p171_p1 = pnand %p170_p0, %p164_p11 }
  0x21   :  { %174 = shalt.err (!%p171_p1)
}
  0x22   :  { %26 = dma.hbm_to_vmem [thread:$0]  %s315_s0, 256, %s251_s15, [#allocation4], %s227_s24, %s227_s24, %s228_s25  }
  0x23   :  { %s229_s10 = smov [#allocation8]   ;;  %s175_s14 = scalar_lea.hbm %s317_s2, 256 }
  0x24   :  { %s52_s11 = sshll.u32 %s229_s10, 4  ;;  %p176_p2 = scmp.ne.s32.totalorder %s317_s2, %s175_s14  ;;  %s53_s11 = int_to_ptr.vmem [resolvable:$true] %s52_s11 }
  0x25   :  { %p179_p3 = scmp.lt.u32.totalorder %s175_s14, %s317_s2 }
  0x27   :  { %p181_p4 = pnand %p179_p3, %p176_p2 }
  0x29   :  { %184 = shalt.err (!%p181_p4)
}
  0x2a   :  { %s185_s20 = scalar_lea.vmem %s53_s11, 256  ;;  %p190_p6 = scmp.lt.s32.totalorder %s53_s11, %s53_s11 }
  0x2b   :  { %p186_p5 = scmp.ne.s32.totalorder %s53_s11, %s185_s20  ;;  %p191_p7 = scmp.lt.s32.totalorder %s185_s20, %s185_s20 }
  0x2d   :  { %p192_p8 = por %p191_p7, %p190_p6 }
  0x2f   :  { %p193_p9 = pnand %p192_p8, %p186_p5 }
  0x31   :  { %196 = shalt.err (!%p193_p9)
}
  0x32   :  { %58 = dma.hbm_to_vmem [thread:$0]  %s317_s2, 256, %s53_s11, [#allocation7], %s227_s24, %s227_s24, %s228_s25  }
  0x33   :  { %219 = dma.done.wait [#allocation4], 256  }
  0x34   :  { %220 = vsyncadd [#allocation4], 4294967040 }
  0x35   :  { %221 = dma.done.wait [#allocation7], 512  }
  0x36   :  { %222 = vsyncadd [#allocation7], 4294966784  ;;  %v80_v0 = vld [vmem:[#allocation3] sm:$0xff]  ;;  %v81_v1 = vld [vmem:[#allocation3 + $0x8] sm:$0xff]  ;;  %s230_s2 = smov [#allocation9]  }
  0x37   :  { %v82_v2 = vld [vmem:[#allocation6] sm:$0xff]  ;;  %v83_v3 = vld [vmem:[#allocation6 + $0x8] sm:$0xff]  ;;  %v86_v5 = vld [vmem:[#allocation8] sm:$0xff]  ;;  %s115_s21 = sshll.u32 %s230_s2, 4  ;;  %s116_s21 = int_to_ptr.vmem [resolvable:$true] %s115_s21 }
  0x38   :  { %v84_v4 = vadd.f32 %v82_v2, %v80_v0  ;;  %v87_v6 = vld [vmem:[#allocation8 + $0x8] sm:$0xff]  ;;  %v85_v7 = vadd.f32 %v83_v3, %v81_v1  ;;  %s197_s22 = scalar_lea.vmem %s116_s21, 16  ;;  %s201_s23 = scalar_lea.vmem %s116_s21, 32 }
  0x39   :  { %p198_p10 = scmp.ne.s32.totalorder %s116_s21, %s197_s22  ;;  %p202_p11 = scmp.lt.s32.totalorder %s116_s21, %s116_s21 }
  0x3a   :  { %v88_v8 = vadd.f32 %v86_v5, %v84_v4  ;;  %v89_v9 = vadd.f32 %v87_v6, %v85_v7  ;;  %p203_p12 = scmp.lt.s32.totalorder %s201_s23, %s197_s22 }
  0x3c   :  { %v101_v10 = vadd.f32 %v89_v9, %v88_v8  ;;  %p204_p13 = por %p203_p12, %p202_p11 }
  0x3e   :  { %v102_v11 = vrot.slane %v101_v10, 4  ;;  %p205_p0 = pnand %p204_p13, %p198_p10 }
  0x40   :  { %v103_v12 = vadd.f32 %v102_v11, %v101_v10 }
  0x42   :  { %v104_v13 = vrot.slane %v103_v12, 2 }
  0x44   :  { %v105_v14 = vadd.f32 %v104_v13, %v103_v12 }
  0x46   :  { %v106_v15 = vrot.slane %v105_v14, 1 }
  0x48   :  { %v107_v16 = vadd.f32 %v106_v15, %v105_v14 }
  0x4a   :  { %108 = vst [vmem:[#allocation9] sm:$0x1] %v107_v16 }
  0x4b   :  { %208 = shalt.err (!%p205_p0)
}
  0x4c   :  { %s209_s26 = scalar_lea.hbm %s318_s3, 16 }
  0x4d   :  { %p210_p1 = scmp.ne.s32.totalorder %s318_s3, %s209_s26  ;;  %p213_p2 = scmp.lt.u32.totalorder %s209_s26, %s318_s3 }
  0x4f   :  { %p215_p3 = pnand %p213_p2, %p210_p1 }
  0x51   :  { %218 = shalt.err (!%p215_p3)
}
  0x52   :  { %118 = dma.vmem_to_hbm [thread:$0]  %s116_s21, 16, %s318_s3, [#allocation5]  }
  0x53   :  { %223 = dma.done.wait [#allocation5], 16  }
  0x54   :  { %224 = vsyncadd [#allocation5], 4294967280 }
  0x55   :  { %122 = vsyncpa [#allocation4], 1 }
  0x56   :  { %123 = vsyncpa [#allocation7], 1 }
  0x57   :  { %124 = vsyncpa [#allocation5], 1 }

</bundles_post_ra>
